<compile_context>
chip_gen: v5e
topology: v5e:2x2
jax: 0.10.0
libtpu: 0.0.40
codegen_flags: <defaults>
</compile_context>

<pallas_src>
import math

import jax
import jax.numpy as jnp
from jax.experimental import pallas as pl
from jax.experimental.pallas import tpu as pltpu


def _repeat_rows(block, reps):
    """Repeat an (f, L) slab `reps` times along the sublane axis.

    `f` is a multiple of 8 whenever reps > 1 (enforced by the wrapper), so the
    broadcast + reshape below is a layout-preserving vreg-tile copy.
    """
    if reps == 1:
        return block
    f, l = block.shape
    return jnp.broadcast_to(block[None, :, :], (reps, f, l)).reshape(reps * f, l)


def _flank_concat_kernel(left_ref, x_ref, right_ref, out_ref):
    # Row-folded 2-D tiles (rows = b_tile * C):
    #   left_ref : (f, L_left)   f = lcm(C, 8) rows (or full rows), VMEM-resident
    #   x_ref    : (rows, L_seq) one batch tile of the sample
    #   right_ref: (f, L_right)
    #   out_ref  : (rows, L_left + L_seq + L_right)
    rows = out_ref.shape[0]
    f = left_ref.shape[0]
    reps = rows // f
    l_len = left_ref.shape[-1]
    x_len = x_ref.shape[-1]
    # Static slice stores — the concatenation itself.
    out_ref[:, 0:l_len] = _repeat_rows(left_ref[...], reps)
    out_ref[:, l_len:l_len + x_len] = x_ref[...]
    out_ref[:, l_len + x_len:] = _repeat_rows(right_ref[...], reps)


def _ceil_div(a, b):
    return -(-a // b)


def _vmem_plan():
    """Return (tile-sizing data budget, scoped VMEM limit) in bytes, HW-derived."""
    try:
        capacity = int(pltpu.get_tpu_info().vmem_capacity_bytes)
    except Exception:
        capacity = 64 * 1024 * 1024              # v7x per-TC VMEM: most conservative
    limit = min(capacity // 2, 64 * 1024 * 1024)  # scoped limit we request
    limit = max(limit, 16 * 1024 * 1024)
    budget = (limit * 3) // 4                     # ~25% headroom for Mosaic scratch
    return budget, limit


def _pick_batch_tile(B, C, L_seq, L_out, itemsize, vmem_budget_bytes,
                     target_out_tile_bytes=2 * 1024 * 1024,
                     min_steps=8, max_rows=2048):
    """Pick a batch-tile size for the row-folded (B*C, L) view.

    Goals: ~1-4 MiB output tile per grid step, rows in 8..2048, >= 8 grid steps
    (even count preferred so both v7x TensorCores get balanced work), all within
    the VMEM budget with 3-deep buffering on the streamed operands.
    """
    out_row = L_out * itemsize
    in_row = L_seq * itemsize
    per_row = 3 * (out_row + in_row)          # triple-buffered x + out, per row

    # Legal tiles: rows = bt*C must be a multiple of 8 (sublane-aligned block)
    # unless the tile covers the whole batch (full-dim block is always legal).
    legal = [bt for bt in range(1, B + 1) if (bt * C) % 8 == 0 or bt == B]
    if not legal:
        return B

    target_rows = max(8, min(max_rows,
                             max(1, target_out_tile_bytes // max(out_row, 1))))

    def score(bt):
        rows = bt * C
        steps = _ceil_div(B, bt)
        s = 0.0
        if rows * per_row > vmem_budget_bytes:
            s += 1e9 + rows                    # over budget: effectively reject
        if rows > max_rows:
            s += 1e3                           # giant tiles: no BW win, VMEM pressure
        if steps < min_steps:
            s += 100.0 * (min_steps - steps)   # want read/write DMA overlap
        if steps > 1 and steps % 2 == 1:
            s += 25.0                          # balanced split across 2 TCs (v7x)
        if B % bt != 0:
            s += 10.0                          # mild preference for exact tiling
        s += abs(rows - target_rows) / float(target_rows)
        return s

    return min(legal, key=score)


def _maybe_buffered_spec(block_shape, index_map, buffer_count=None):
    """BlockSpec with optional deeper pipelining; falls back to the plain spec
    if this Pallas build has no pipeline_mode/Buffered support."""
    if buffer_count is None:
        return pl.BlockSpec(block_shape, index_map)
    try:
        return pl.BlockSpec(block_shape, index_map,
                            pipeline_mode=pl.Buffered(buffer_count))
    except (TypeError, AttributeError):
        return pl.BlockSpec(block_shape, index_map)


def flank_builder_forward(my_sample, left_flank, right_flank):
    """Pallas implementation of FlankBuilder.forward.

    my_sample  : (B, C, L_seq)
    left_flank : (1, C, L_left)   (broadcast over batch, like torch .expand)
    right_flank: (1, C, L_right)
    returns    : (B, C, L_left + L_seq + L_right)
    """
    B, C, L_seq = my_sample.shape
    L_left = left_flank.shape[-1]
    L_right = right_flank.shape[-1]
    L_out = L_left + L_seq + L_right

    # torch.cat type-promotes across pieces; match that instead of down-casting
    # the flank buffers to the sample dtype.
    out_dtype = jnp.result_type(my_sample.dtype, left_flank.dtype, right_flank.dtype)
    itemsize = jnp.dtype(out_dtype).itemsize

    vmem_budget, vmem_limit = _vmem_plan()
    b_tile = _pick_batch_tile(B, C, L_seq, L_out, itemsize, vmem_budget)
    rows = b_tile * C
    num_tiles = _ceil_div(B, b_tile)

    # Row-fold: (B, C, L) -> (B*C, L) is a free, layout-preserving reshape and
    # packs batch*channels densely into the sublane axis.
    x2d = my_sample.reshape(B * C, L_seq).astype(out_dtype)

    # Flank slabs: tile the (C, L) flanks only to lcm(C, 8) rows (a few KB) so
    # they are sublane-aligned; the expansion to the full row tile happens
    # in-kernel as a layout-preserving broadcast.  Constant index_map below ->
    # fetched into VMEM exactly once and kept resident.
    f_rows = (8 * C) // math.gcd(8, C)            # lcm(C, 8)
    if rows % f_rows != 0:                        # tiny/odd batches: full-row slab
        f_rows = rows
    left2d = jnp.tile(left_flank.reshape(C, L_left).astype(out_dtype),
                      (f_rows // C, 1))
    right2d = jnp.tile(right_flank.reshape(C, L_right).astype(out_dtype),
                       (f_rows // C, 1))

    # Deeper buffering on the streamed operands only pays off with enough grid
    # steps (pure-copy kernel: keeps more DMAs outstanding, mainly v7x HBM).
    stream_buffers = 3 if num_tiles >= 4 else None

    bytes_accessed = itemsize * (B * C * L_seq                 # sample read
                                 + f_rows * (L_left + L_right)  # flank read (once)
                                 + B * C * L_out)               # output write
    cost = pl.CostEstimate(flops=0, transcendentals=0,
                           bytes_accessed=int(bytes_accessed))

    out2d = pl.pallas_call(
        _flank_concat_kernel,
        out_shape=jax.ShapeDtypeStruct((B * C, L_out), out_dtype),
        grid=(num_tiles,),
        in_specs=[
            # Flanks: constant block index -> DMA'd into VMEM once, stays resident.
            pl.BlockSpec((f_rows, L_left), lambda i: (0, 0)),
            # Sample: one batch tile (b_tile*C rows) per grid step.
            _maybe_buffered_spec((rows, L_seq), lambda i: (i, 0), stream_buffers),
            pl.BlockSpec((f_rows, L_right), lambda i: (0, 0)),
        ],
        out_specs=_maybe_buffered_spec((rows, L_out), lambda i: (i, 0), stream_buffers),
        compiler_params=pltpu.CompilerParams(
            dimension_semantics=("parallel",),
            vmem_limit_bytes=int(vmem_limit),
        ),
        cost_estimate=cost,
    )(left2d, x2d, right2d)

    return out2d.reshape(B, C, L_out)


if __name__ == "__main__":
    key = jax.random.PRNGKey(0)
    k_sample, k_left, k_right = jax.random.split(key, 3)

    # Small shapes consistent with a one-hot DNA-sequence use case:
    # batch=2, channels=4 (A/C/G/T), sequence length=8, flank lengths=16 each.
    B, C, L_seq = 2, 4, 8
    L_left, L_right = 16, 16

    my_sample = jax.random.uniform(k_sample, (B, C, L_seq), dtype=jnp.float32)

    # Deterministically-initialized "buffers" (synthetic one-hot flanks).
    left_idx = jax.random.randint(k_left, (L_left,), 0, C)
    right_idx = jax.random.randint(k_right, (L_right,), 0, C)
    left_flank = jax.nn.one_hot(left_idx, C, dtype=jnp.float32).T[None]    # (1, C, L_left)
    right_flank = jax.nn.one_hot(right_idx, C, dtype=jnp.float32).T[None]  # (1, C, L_right)

    out = flank_builder_forward(my_sample, left_flank, right_flank)
    out = jax.block_until_ready(out)

    # Reference check (plain JAX) — same semantics as the torch module.
    ref = jnp.concatenate(
        [jnp.broadcast_to(left_flank, (B, C, L_left)),
         my_sample,
         jnp.broadcast_to(right_flank, (B, C, L_right))],
        axis=-1,
    )
    assert out.shape == (B, C, L_left + L_seq + L_right)
    assert jnp.allclose(out, ref), "Pallas output mismatch vs reference concat"

    print("KERNEL_OK")
</pallas_src>

<mosaic_0001>
module attributes {stable_mosaic.version = 11 : i64} {
  func.func @_flank_concat_kernel(%arg0: i32, %arg1: memref<8x16xf32, #tpu.memory_space<vmem>>, %arg2: memref<8x8xf32, #tpu.memory_space<vmem>>, %arg3: memref<8x16xf32, #tpu.memory_space<vmem>>, %arg4: memref<8x40xf32, #tpu.memory_space<vmem>>) attributes {dimension_semantics = [#tpu.dimension_semantics<parallel>], iteration_bounds = array<i64: 1>, scalar_prefetch = 0 : i64, scratch_operands = 0 : i64, tpu.core_type = #tpu.core_type<tc>, window_params = [{pipeline_mode = #tpu.pipeline_mode<synchronous>, transform_indices = @transform_0, window_bounds = array<i64: 8, 16>}, {transform_indices = @transform_1, window_bounds = array<i64: 8, 8>}, {pipeline_mode = #tpu.pipeline_mode<synchronous>, transform_indices = @transform_2, window_bounds = array<i64: 8, 16>}, {transform_indices = @transform_3, window_bounds = array<i64: 8, 40>}]} {
    %c0 = arith.constant 0 : index
    %c0_0 = arith.constant 0 : index
    %0 = vector.load %arg1[%c0, %c0_0] : memref<8x16xf32, #tpu.memory_space<vmem>>, vector<8x16xf32>
    %c0_1 = arith.constant 0 : index
    %c0_2 = arith.constant 0 : index
    %1 = vector.load %arg4[%c0_1, %c0_2] : memref<8x40xf32, #tpu.memory_space<vmem>>, vector<8x16xf32>
    tpu.vector_store %arg4[%c0_1, %c0_2], %0 {strides = array<i32>} : memref<8x40xf32, #tpu.memory_space<vmem>>, vector<8x16xf32>,
    %c0_3 = arith.constant 0 : index
    %c0_4 = arith.constant 0 : index
    %2 = vector.load %arg2[%c0_3, %c0_4] : memref<8x8xf32, #tpu.memory_space<vmem>>, vector<8x8xf32>
    %c0_5 = arith.constant 0 : index
    %c16 = arith.constant 16 : index
    %3 = vector.load %arg4[%c0_5, %c16] : memref<8x40xf32, #tpu.memory_space<vmem>>, vector<8x8xf32>
    tpu.vector_store %arg4[%c0_5, %c16], %2 {strides = array<i32>} : memref<8x40xf32, #tpu.memory_space<vmem>>, vector<8x8xf32>,
    %c0_6 = arith.constant 0 : index
    %c0_7 = arith.constant 0 : index
    %4 = vector.load %arg3[%c0_6, %c0_7] : memref<8x16xf32, #tpu.memory_space<vmem>>, vector<8x16xf32>
    %c0_8 = arith.constant 0 : index
    %c24 = arith.constant 24 : index
    %5 = vector.load %arg4[%c0_8, %c24] : memref<8x40xf32, #tpu.memory_space<vmem>>, vector<8x16xf32>
    tpu.vector_store %arg4[%c0_8, %c24], %4 {strides = array<i32>} : memref<8x40xf32, #tpu.memory_space<vmem>>, vector<8x16xf32>,
    return
  }
  func.func @transform_0(%arg0: i32) -> (i32, i32) {
    %c0_i32 = arith.constant 0 : i32
    %c0_i32_0 = arith.constant 0 : i32
    %c0_i32_1 = arith.constant 0 : i32
    return %c0_i32, %c0_i32_0 : i32, i32
  }
  func.func @transform_1(%arg0: i32) -> (i32, i32) {
    %c0_i32 = arith.constant 0 : i32
    %c0_i32_0 = arith.constant 0 : i32
    return %arg0, %c0_i32 : i32, i32
  }
  func.func @transform_2(%arg0: i32) -> (i32, i32) {
    %c0_i32 = arith.constant 0 : i32
    %c0_i32_0 = arith.constant 0 : i32
    %c0_i32_1 = arith.constant 0 : i32
    return %c0_i32, %c0_i32_0 : i32, i32
  }
  func.func @transform_3(%arg0: i32) -> (i32, i32) {
    %c0_i32 = arith.constant 0 : i32
    %c0_i32_0 = arith.constant 0 : i32
    return %arg0, %c0_i32 : i32, i32
  }
}

</mosaic_0001>

<bundles_post_ra>
// kernel: tpu_custom_call.1
= control target key start
LH: loop header
LB: loop body
LE: loop exit
PB: predicated region body
PF: predicated region fallthrough
CT: control target
= control target key end

     0   :  { %8 = vsyncpa [#allocation3], 0  ;;  %s237_s0 = inlined_call_operand.hbm [shape: f32[8,16], index: 0, kind: input, shape index: {}]   ;;  %s238_s1 = inlined_call_operand.hbm [shape: f32[8,8], index: 1, kind: input, shape index: {}]   ;;  %s239_s2 = inlined_call_operand.hbm [shape: f32[8,16], index: 2, kind: input, shape index: {}]   ;;  %s240_s3 = inlined_call_operand.hbm [shape: f32[8,40], index: 3, kind: output, shape index: {}]  }
   0x1   :  { %9 = vsyncpa [#allocation6], 0  ;;  %s27_s14 = sshll.u32 %s238_s1, 4  ;;  %s28_s14 = int_to_ptr.hbm [resolvable:$true] %s27_s14 }
   0x2   :  { %10 = vsyncpa [#allocation4], 0  ;;  %s199_s15 = smov [#allocation5]   ;;  %s16_s19 = sshll.u32 %s237_s0, 4  ;;  %s17_s19 = int_to_ptr.hbm [resolvable:$true] %s16_s19 }
   0x3   :  { %s29_s16 = sshll.u32 %s199_s15, 4  ;;  %s200_s20 = smov [#allocation2]   ;;  %s30_s16 = int_to_ptr.vmem [resolvable:$true] %s29_s16 }
   0x4   :  { %32 = dma.hbm_to_vmem [thread:$0]  %s28_s14, 128, %s30_s16, [#allocation6]  }
   0x5   :  { %s18_s21 = sshll.u32 %s200_s20, 4  ;;  %s38_s24 = sshll.u32 %s239_s2, 4  ;;  %s19_s21 = int_to_ptr.vmem [resolvable:$true] %s18_s21  ;;  %s39_s24 = int_to_ptr.hbm [resolvable:$true] %s38_s24 }
   0x6   :  { %21 = dma.hbm_to_vmem [thread:$0]  %s17_s19, 128, %s19_s21, [#allocation3]  }
   0x7   :  { %s201_s1 = smov [#allocation7]  }
   0x8   :  { %s40_s25 = sshll.u32 %s201_s1, 4  ;;  %s41_s25 = int_to_ptr.vmem [resolvable:$true] %s40_s25 }
   0x9   :  { %43 = dma.hbm_to_vmem [thread:$0]  %s39_s24, 128, %s41_s25, [#allocation6]  }
   0xa   :  { %193 = dma.done.wait [#allocation3], 128  }
   0xb   :  { %194 = vsyncadd [#allocation3], 4294967168 }
   0xc   :  { %195 = dma.done.wait [#allocation6], 256  }
   0xd   :  { %196 = vsyncadd [#allocation6], 4294967040  ;;  %v59_v0 = vld [vmem:[#allocation5] sm:$0xff]  ;;  %s202_s0 = smov 16   ;;  %v66_v1 = vld [vmem:[#allocation7] sm:$0xff]  ;;  %s203_s26 = smov 24  }
   0xe   :  { %61 = vrot.lane.b32.xlu0 %v59_v0, %s202_s0  ;;  %vm57_vm0 = vcmask 130048   ;;  %v56_v2 = vld [vmem:[#allocation2] sm:$0xff]  ;;  %vm64_vm1 = vcmask 195712   ;;  %s204_s2 = smov [#allocation8]   ;;  %s80_s30 = sshll.u32 %s240_s3, 4  ;;  %vm71_vm2 = vcmask 326848   ;;  %s81_s30 = int_to_ptr.hbm [resolvable:$true] %s80_s30 }
   0xf   :  { %58 = vst.msk [vmem:[#allocation8] sm:$0xff] %vm57_vm0, %v56_v2  ;;  %s78_s27 = sshll.u32 %s204_s2, 4  ;;  %s79_s27 = int_to_ptr.vmem [resolvable:$true] %s78_s27 }
  0x16   :  { %68 = vrot.lane.b32.xlu0 %v66_v1, %s203_s26 }
  0x80   :  { %v62_v3 = vpop.permute.xlu0 %61 }
  0x81   :  { %65 = vst.msk [vmem:[#allocation8] sm:$0xff] %vm64_vm1, %v62_v3 }
  0x88   :  { %v69_v4 = vpop.permute.xlu0 %68 }
  0x89   :  { %72 = vst.msk [vmem:[#allocation8] sm:$0xff] %vm71_vm2, %v69_v4 }
  0x8a   :  { %83 = dma.vmem_to_hbm [thread:$0]  %s79_s27, 128, %s81_s30, [#allocation4]  }
  0x8b   :  { %197 = dma.done.wait [#allocation4], 128  }
  0x8c   :  { %198 = vsyncadd [#allocation4], 4294967168 }
  0x8d   :  { %88 = vsyncpa [#allocation3], 1 }
  0x8e   :  { %89 = vsyncpa [#allocation6], 1 }
  0x8f   :  { %90 = vsyncpa [#allocation4], 1 }

</bundles_post_ra>
